<compile_context>
chip_gen: v7x
topology: tpu7x:2x2x1
jax: 0.10.0
libtpu: 0.0.40
codegen_flags: <defaults>
</compile_context>

<pallas_src>
import math

import jax
import jax.numpy as jnp
from jax.experimental import pallas as pl
from jax.experimental.pallas import tpu as pltpu

_INV_SQRT2 = 0.7071067811865476


def _gelu_exact(x):
    # nn.GELU() default: exact erf formulation.
    return 0.5 * x * (1.0 + jax.lax.erf(x * _INV_SQRT2))


# --------------------------- fused single-pass path ---------------------------

def _se_fused_kernel(x_ref, w1t_ref, w2t_ref, o_ref):
    # x_ref: (Bt, C, S)  -- channels on sublanes, spatial on lanes (native layout).
    xf = x_ref[...].astype(jnp.float32)                       # upcast once per tile
    pooled = jnp.mean(xf, axis=-1)                            # (Bt, C), f32 accumulation

    # excite MLP (batched rows -> non-degenerate MXU shape)
    h = jnp.dot(pooled, w1t_ref[...], preferred_element_type=jnp.float32)   # (Bt, hid)
    h = _gelu_exact(h)
    y = jnp.dot(h, w2t_ref[...], preferred_element_type=jnp.float32)        # (Bt, C)
    g = jax.nn.sigmoid(y)                                                    # (Bt, C)

    o_ref[...] = (xf * g[:, :, None]).astype(o_ref.dtype)


# --------------------------- tiled two-pass path ------------------------------

def _make_pool_gate_kernel(total_s):
    inv_s = 1.0 / float(total_s)

    def kernel(x_ref, w1t_ref, w2_ref, g_ref, acc_ref):
        # x_ref: (C, TS); w1t_ref: (C, hid); w2_ref: (C, hid); g_ref/acc_ref: (C, 1)
        s = pl.program_id(1)

        @pl.when(s == 0)
        def _():
            acc_ref[...] = jnp.zeros_like(acc_ref)

        acc_ref[...] += jnp.sum(x_ref[...].astype(jnp.float32), axis=-1, keepdims=True)

        @pl.when(s == pl.num_programs(1) - 1)
        def _():
            pooled = acc_ref[...] * inv_s                                    # (C, 1)
            # tiny MLP on the VPU: broadcast-multiply + small reductions (no MXU push/pop)
            h = jnp.sum(pooled * w1t_ref[...], axis=0, keepdims=True)        # (1, hid)
            h = _gelu_exact(h)
            y = jnp.sum(w2_ref[...] * h, axis=1, keepdims=True)              # (C, 1)
            g_ref[...] = jax.nn.sigmoid(y).astype(g_ref.dtype)

    return kernel


def _se_scale_kernel(x_ref, g_ref, o_ref):
    # x_ref: (C, TS), g_ref: (C, 1) -> broadcast gate over lanes.
    o_ref[...] = (x_ref[...].astype(jnp.float32) * g_ref[...]).astype(o_ref.dtype)


# --------------------------------- wrapper ------------------------------------

def _pick_batch_block(batch, per_elem_bytes, budget_bytes):
    """Largest divisor Bt of batch whose fused working set fits; prefer >=2 grid steps."""
    divisors = [d for d in range(1, batch + 1) if batch % d == 0]
    fitting = [d for d in divisors if 4 * d * per_elem_bytes <= budget_bytes]
    if not fitting:
        return None
    pref = [d for d in fitting if batch // d >= 2]
    return max(pref) if pref else max(fitting)


def _pick_spatial_tile(total_s, per_col_bytes, budget_bytes):
    """Largest multiple-of-128 divisor of S whose tiled working set fits; else full S."""
    best = None
    t = 128
    while t <= total_s:
        if total_s % t == 0 and 4 * t * per_col_bytes <= budget_bytes:
            best = t
        t += 128
    return best if best is not None else total_s


def se_forward(x_ncdhw, w1, w2, *, spatial_tile=None, fused_vmem_budget=24 << 20):
    """x_ncdhw: (B, C, D, H, W).  w1: (hid, C), w2: (C, hid) in PyTorch Linear layout."""
    B, C = x_ncdhw.shape[0], x_ncdhw.shape[1]
    S = 1
    for d in x_ncdhw.shape[2:]:
        S *= d
    hid = w1.shape[0]
    assert w1.shape == (hid, C) and w2.shape == (C, hid)

    # Native layout: a free reshape, NO transposes around the kernel.
    x = x_ncdhw.reshape(B, C, S)
    itemsize = jnp.dtype(x.dtype).itemsize
    per_elem_bytes = C * S * itemsize

    if spatial_tile is None:
        bt = _pick_batch_block(B, per_elem_bytes, fused_vmem_budget)
    else:
        bt = None  # caller forces the spatially-tiled path

    if bt is not None:
        # ---- fused single-pass: 1 HBM read + 1 HBM write of x ----
        working = 4 * bt * per_elem_bytes + (w1.size + w2.size) * 4
        vmem_limit = int(min(max(2 * working, 32 << 20), 56 << 20))
        w1t = w1.T  # (C, hid)   (tiny; negligible cost)
        w2t = w2.T  # (hid, C)
        out = pl.pallas_call(
            _se_fused_kernel,
            out_shape=jax.ShapeDtypeStruct((B, C, S), x.dtype),
            grid_spec=pltpu.PrefetchScalarGridSpec(
                num_scalar_prefetch=0,
                grid=(B // bt,),
                in_specs=[
                    pl.BlockSpec((bt, C, S), lambda b: (b, 0, 0)),
                    pl.BlockSpec((C, hid), lambda b: (0, 0)),
                    pl.BlockSpec((hid, C), lambda b: (0, 0)),
                ],
                out_specs=pl.BlockSpec((bt, C, S), lambda b: (b, 0, 0)),
            ),
            compiler_params=pltpu.CompilerParams(
                dimension_semantics=("parallel",),
                vmem_limit_bytes=vmem_limit,
            ),
        )(x, w1t, w2t)
        return out.reshape(x_ncdhw.shape)

    # ---- spatially tiled two-pass path (large D*H*W / small-VMEM chips) ----
    ts = spatial_tile if spatial_tile is not None else _pick_spatial_tile(
        S, C * itemsize, 16 << 20)
    assert S % ts == 0 and (ts % 128 == 0 or ts == S)
    n_s = S // ts
    w1t = w1.T  # (C, hid)

    gate = pl.pallas_call(
        _make_pool_gate_kernel(S),
        out_shape=jax.ShapeDtypeStruct((B, C, 1), jnp.float32),
        grid_spec=pltpu.PrefetchScalarGridSpec(
            num_scalar_prefetch=0,
            grid=(B, n_s),
            in_specs=[
                pl.BlockSpec((None, C, ts), lambda b, s: (b, 0, s)),
                pl.BlockSpec((C, hid), lambda b, s: (0, 0)),   # W1^T
                pl.BlockSpec((C, hid), lambda b, s: (0, 0)),   # W2 (original layout)
            ],
            out_specs=pl.BlockSpec((None, C, 1), lambda b, s: (b, 0, 0)),
            scratch_shapes=[pltpu.VMEM((C, 1), jnp.float32)],
        ),
        compiler_params=pltpu.CompilerParams(
            dimension_semantics=("parallel", "arbitrary"),
            vmem_limit_bytes=32 << 20,
        ),
    )(x, w1t, w2)

    out = pl.pallas_call(
        _se_scale_kernel,
        out_shape=jax.ShapeDtypeStruct((B, C, S), x.dtype),
        grid_spec=pltpu.PrefetchScalarGridSpec(
            num_scalar_prefetch=0,
            grid=(B, n_s),
            in_specs=[
                pl.BlockSpec((None, C, ts), lambda b, s: (b, 0, s)),
                pl.BlockSpec((None, C, 1), lambda b, s: (b, 0, 0)),
            ],
            out_specs=pl.BlockSpec((None, C, ts), lambda b, s: (b, 0, s)),
        ),
        compiler_params=pltpu.CompilerParams(
            dimension_semantics=("parallel", "parallel"),
            vmem_limit_bytes=32 << 20,
        ),
    )(x, gate)
    return out.reshape(x_ncdhw.shape)


def se_reference(x_ncdhw, w1, w2):
    """Pure-JAX reference mirroring the PyTorch forward exactly."""
    y = jnp.mean(x_ncdhw, axis=(2, 3, 4))                          # (B, C)
    h = y @ w1.T
    h = 0.5 * h * (1.0 + jax.lax.erf(h / math.sqrt(2.0)))
    g = jax.nn.sigmoid(h @ w2.T)                                   # (B, C)
    return x_ncdhw * g[:, :, None, None, None]


if __name__ == "__main__":
    # Module config: SE(inp=16, oup=8, expansion=0.25) -> hidden = int(16*0.25) = 4.
    inp, oup, expansion = 16, 8, 0.25
    hid = int(inp * expansion)
    B, C, D, H, W = 2, oup, 4, 8, 8          # S = 256

    key = jax.random.PRNGKey(0)
    kx, k1, k2 = jax.random.split(key, 3)

    x = jax.random.normal(kx, (B, C, D, H, W), dtype=jnp.float32)
    w1 = jax.random.normal(k1, (hid, oup), dtype=jnp.float32) * 0.1   # fc[0].weight
    w2 = jax.random.normal(k2, (oup, hid), dtype=jnp.float32) * 0.1   # fc[2].weight

    ref = se_reference(x, w1, w2)

    # Fused single-pass path (small slabs fit VMEM).
    out_fused = jax.block_until_ready(se_forward(x, w1, w2))
    assert out_fused.shape == (B, C, D, H, W)
    assert jnp.max(jnp.abs(out_fused - ref)) < 1e-5

    # Spatially-tiled two-pass path (what large D*H*W / v7x VMEM limits would select).
    out_tiled = jax.block_until_ready(se_forward(x, w1, w2, spatial_tile=128))
    assert jnp.max(jnp.abs(out_tiled - ref)) < 1e-5

    print("KERNEL_OK")
</pallas_src>

<mosaic_0001>
module attributes {stable_mosaic.version = 11 : i64} {
  func.func @_se_fused_kernel(%arg0: i32, %arg1: memref<1x8x256xf32, #tpu.memory_space<vmem>>, %arg2: memref<8x4xf32, #tpu.memory_space<vmem>>, %arg3: memref<4x8xf32, #tpu.memory_space<vmem>>, %arg4: memref<1x8x256xf32, #tpu.memory_space<vmem>>) attributes {dimension_semantics = [#tpu.dimension_semantics<parallel>], iteration_bounds = array<i64: 2>, scalar_prefetch = 0 : i64, scratch_operands = 0 : i64, tpu.core_type = #tpu.core_type<tc>, window_params = [{transform_indices = @transform_0, window_bounds = array<i64: 1, 8, 256>}, {pipeline_mode = #tpu.pipeline_mode<synchronous>, transform_indices = @transform_1, window_bounds = array<i64: 8, 4>}, {pipeline_mode = #tpu.pipeline_mode<synchronous>, transform_indices = @transform_2, window_bounds = array<i64: 4, 8>}, {transform_indices = @transform_3, window_bounds = array<i64: 1, 8, 256>}]} {
    %c0 = arith.constant 0 : index
    %c0_0 = arith.constant 0 : index
    %c0_1 = arith.constant 0 : index
    %0 = vector.load %arg1[%c0, %c0_0, %c0_1] : memref<1x8x256xf32, #tpu.memory_space<vmem>>, vector<1x8x256xf32>
    %cst = arith.constant dense<0.000000e+00> : vector<1x8xf32>
    %1 = vector.multi_reduction <add>, %0, %cst [2] : vector<1x8x256xf32> to vector<1x8xf32>
    %cst_2 = arith.constant 2.560000e+02 : f32
    %2 = vector.broadcast %cst_2 : f32 to vector<1x8xf32>
    %3 = arith.divf %1, %2 : vector<1x8xf32>
    %c0_3 = arith.constant 0 : index
    %c0_4 = arith.constant 0 : index
    %4 = vector.load %arg2[%c0_3, %c0_4] : memref<8x4xf32, #tpu.memory_space<vmem>>, vector<8x4xf32>
    %cst_5 = arith.constant dense<0.000000e+00> : vector<1x4xf32>
    %5 = tpu.matmul %3, %4, %cst_5 {dimension_numbers = #tpu.dot_dimension_numbers<[1], [0], [0], [1], [0, 0, 1, 1], [], []>} : vector<1x8xf32>, vector<8x4xf32>, vector<1x4xf32> -> vector<1x4xf32>
    %cst_6 = arith.constant 5.000000e-01 : f32
    %6 = vector.broadcast %cst_6 : f32 to vector<1x4xf32>
    %7 = arith.mulf %6, %5 : vector<1x4xf32>
    %cst_7 = arith.constant 0.707106769 : f32
    %8 = vector.broadcast %cst_7 : f32 to vector<1x4xf32>
    %9 = arith.mulf %5, %8 : vector<1x4xf32>
    %10 = math.erf %9 : vector<1x4xf32>
    %cst_8 = arith.constant 1.000000e+00 : f32
    %11 = vector.broadcast %cst_8 : f32 to vector<1x4xf32>
    %12 = arith.addf %11, %10 : vector<1x4xf32>
    %13 = arith.mulf %7, %12 : vector<1x4xf32>
    %c0_9 = arith.constant 0 : index
    %c0_10 = arith.constant 0 : index
    %14 = vector.load %arg3[%c0_9, %c0_10] : memref<4x8xf32, #tpu.memory_space<vmem>>, vector<4x8xf32>
    %cst_11 = arith.constant dense<0.000000e+00> : vector<1x8xf32>
    %15 = tpu.matmul %13, %14, %cst_11 {dimension_numbers = #tpu.dot_dimension_numbers<[1], [0], [0], [1], [0, 0, 1, 1], [], []>} : vector<1x4xf32>, vector<4x8xf32>, vector<1x8xf32> -> vector<1x8xf32>
    %16 = arith.negf %15 : vector<1x8xf32>
    %17 = math.exp %16 : vector<1x8xf32>
    %cst_12 = arith.constant 1.000000e+00 : f32
    %18 = vector.broadcast %cst_12 : f32 to vector<1x8xf32>
    %19 = arith.addf %18, %17 : vector<1x8xf32>
    %20 = arith.divf %18, %19 : vector<1x8xf32>
    %21 = vector.shape_cast %20 : vector<1x8xf32> to vector<1x8x1xf32>
    %22 = vector.broadcast %21 : vector<1x8x1xf32> to vector<1x8x256xf32>
    %23 = arith.mulf %0, %22 : vector<1x8x256xf32>
    %c0_13 = arith.constant 0 : index
    %c0_14 = arith.constant 0 : index
    %c0_15 = arith.constant 0 : index
    %24 = vector.load %arg4[%c0_13, %c0_14, %c0_15] : memref<1x8x256xf32, #tpu.memory_space<vmem>>, vector<1x8x256xf32>
    tpu.vector_store %arg4[%c0_13, %c0_14, %c0_15], %23 {strides = array<i32>} : memref<1x8x256xf32, #tpu.memory_space<vmem>>, vector<1x8x256xf32>,
    return
  }
  func.func @transform_0(%arg0: i32) -> (i32, i32, i32) {
    %c0_i32 = arith.constant 0 : i32
    %c0_i32_0 = arith.constant 0 : i32
    %c0_i32_1 = arith.constant 0 : i32
    return %arg0, %c0_i32, %c0_i32_0 : i32, i32, i32
  }
  func.func @transform_1(%arg0: i32) -> (i32, i32) {
    %c0_i32 = arith.constant 0 : i32
    %c0_i32_0 = arith.constant 0 : i32
    %c0_i32_1 = arith.constant 0 : i32
    return %c0_i32, %c0_i32_0 : i32, i32
  }
  func.func @transform_2(%arg0: i32) -> (i32, i32) {
    %c0_i32 = arith.constant 0 : i32
    %c0_i32_0 = arith.constant 0 : i32
    %c0_i32_1 = arith.constant 0 : i32
    return %c0_i32, %c0_i32_0 : i32, i32
  }
  func.func @transform_3(%arg0: i32) -> (i32, i32, i32) {
    %c0_i32 = arith.constant 0 : i32
    %c0_i32_0 = arith.constant 0 : i32
    %c0_i32_1 = arith.constant 0 : i32
    return %arg0, %c0_i32, %c0_i32_0 : i32, i32, i32
  }
}

</mosaic_0001>

<bundles_post_ra>
// kernel: tpu_custom_call.1
= control target key start
LH: loop header
LB: loop body
LE: loop exit
PB: predicated region body
PF: predicated region fallthrough
CT: control target
= control target key end

     0   :  { %8 = vsyncpa [#allocation3], 0  ;;  %s842_s0 = inlined_call_operand.hbm [shape: f32[2,8,256], index: 0, kind: input, shape index: {}]   ;;  %s843_s1 = inlined_call_operand.vmem [shape: f32[8,4], index: 1, kind: input, shape index: {}]   ;;  %s844_s2 = inlined_call_operand.vmem [shape: f32[4,8], index: 2, kind: input, shape index: {}]   ;;  %s845_s3 = inlined_call_operand.hbm [shape: f32[2,8,256], index: 3, kind: output, shape index: {}]  }
   0x1   :  { %10 = vsyncpa [#allocation3 + $0x1], 0 }
   0x2   :  { %11 = vsyncpa [#allocation4], 0 }
   0x3   :  { %13 = vsyncpa [#allocation4 + $0x1], 0  ;;  %s671_s12 = smov 0   ;;  %s673_s13 = smov 0  }
   0x4   :  { %s675_s14 = smov 0   ;;  %s677_s15 = smov 0  }
   0x5 LB: > { %s692_s16 = sadd.s32 4294967295, %s645_s15   ;;  %s461_s17 = sadd.s32 4294967294, %s645_s15   ;;  %s645_s15 = sphi %s677_s15, %s860_s15   ;;  %s641_s14 = sphi %s675_s14, %s859_s14   ;;  %s637_s13 = sphi %s673_s13, %s858_s13   ;;  %s633_s12 = sphi %s671_s12, %s857_s12  }
   0x6   : > { %s696_s18 = sadd.s32 1, %s645_s15   ;;  %s26_s19 = sadd.s32 1, %s641_s14 }
   0x7   : > { %s23_s20 = ssub.s32 %s645_s15, %s696_s18  ;;  %p33_p0 = scmp.ne.s32.totalorder %s641_s14, %s637_s13 }
   0x8   : > { %p24_p1 = scmp.eq.s32.totalorder %s23_s20, 0  ;;  %p34_p2 = scmp.eq.s32.totalorder %s645_s15, 0 }
   0x9   : > { %p39_p3 = scmp.ne.s32.totalorder %s637_s13, %s633_s12  ;;  %p40_p4 = scmp.eq.s32.totalorder %s692_s16, 0 }
   0xa   : > { %s708_s21 = scalar_select %p24_p1, %s641_s14, %s26_s19  }
   0xb   : > { %p710_p5 = por %p34_p2, %p33_p0  ;;  %p714_p6 = por %p40_p4, %p39_p3 }
   0xc   : > { %p105_p7 = scmp.eq.s32.totalorder %s692_s16, 1  ;;  %p111_p8 = scmp.eq.s32.totalorder %s461_s17, 1 }
   0xd   : > { %p507_p10 = scmp.lt.s32.totalorder %s645_s15, 2  ;;  %s137_s26 = sand.u32 1, %s641_s14  }
   0xe   : > { %p721_p11 = por %p105_p7, %p33_p0  ;;  %p725_p12 = por %p111_p8, %p39_p3 }
   0xf   : > { %s479_s27 = sshll.u32 %s645_s15, 8  ;;  %s464_s28 = sshll.u32 %s137_s26, 4 }
  0x10   : > { %s849_s24 = scalar_select %p721_p11, 1, 0 }
  0x11   : > { %s850_s25 = scalar_select %p725_p12, 1, 0 }
  0x12   : > { %s734_s4 = scalar_lea.hbm %s842_s0, %s479_s27  ;;  %s141_s5 = scalar_lea.vmem [#allocation2], %s464_s28 }
  0x13   : > { %s149_s6 = sshll.u32 %s141_s5, 4  ;;  %p738_p13 = pnand %p507_p10, %p710_p5  ;;  %s742_s6 = int_to_ptr.vmem [resolvable:$true] %s149_s6 }
  0x14   : > { %s138_s8 = scalar_lea.sflag [#allocation3], %s137_s26  ;;  %s549_s9 = scalar_lea.hbm %s734_s4, 256 }
  0x15   : > { %p550_p2 = scmp.ne.s32.totalorder %s734_s4, %s549_s9  ;;  %p551_p3 = pneg %p738_p13 }
  0x16   : > { %s554_s17 = scalar_lea.hbm %s842_s0, 512  ;;  %p555_p5 = scmp.lt.u32.totalorder %s734_s4, %s842_s0 }
  0x17   : > { %p552_p4 = pnand %p551_p3, %p550_p2  ;;  %p556_p8 = scmp.lt.u32.totalorder %s554_s17, %s549_s9 }
  0x18   : > { %p558_p9 = scmp.lt.u32.totalorder %s549_s9, %s734_s4 }
  0x19   : > { %p553_p7 = pneg %p552_p4  ;;  %p557_p10 = por %p556_p8, %p555_p5 }
  0x1b   : > { %p559_p0 = por %p558_p9, %p557_p10 }
  0x1d   : > { %p560_p1 = pnand %p559_p0, %p553_p7 }
  0x1f   : > { %563 = shalt.err (!%p560_p1)
}
  0x20   : > { %s564_s22 = scalar_lea.vmem %s742_s6, 256  ;;  %s647_s26 = smov [#allocation2]  }
  0x21   : > { %p565_p2 = scmp.ne.s32.totalorder %s742_s6, %s564_s22  ;;  %s569_s27 = sshll.u32 %s647_s26, 4  ;;  %s570_s27 = int_to_ptr.vmem [resolvable:$false] %s569_s27 }
  0x22   : > { %s571_s28 = scalar_lea.vmem %s570_s27, 512  ;;  %p572_p11 = scmp.lt.s32.totalorder %s742_s6, %s570_s27 }
  0x23   : > { %p567_p4 = pnand %p565_p2, %p551_p3  ;;  %p573_p5 = scmp.lt.s32.totalorder %s571_s28, %s564_s22 }
  0x25   : > { %p568_p12 = pneg %p567_p4  ;;  %p574_p8 = por %p573_p5, %p572_p11 }
  0x27   : > { %p575_p9 = pnand %p574_p8, %p568_p12 }
  0x29   : > { %578 = shalt.err (!%p575_p9)
}
  0x2a   : > { %502 = dma.hbm_to_vmem [thread:$0]  (!%p738_p13), %s734_s4, 256, %s742_s6, %s138_s8  }
  0x2b   : > { %p852_p0 = scmp.lt.s32.totalorder %s645_s15, 3  ;;  %p853_p1 = scmp.ge.s32.totalorder %s645_s15, 1 }
  0x2d   : > { %p155_p3 = pnand %p853_p1, %p852_p0 }
  0x2e   : > { %s776_s29 = sand.u32 (!%p155_p3), 1, %s637_s13  }
  0x2f   : > { %158 = sbr.rel (%p155_p3) target bundleno = 804 (0x324), region = 32  ;;  %s468_s30 = sshll.u32 (!%p155_p3), %s776_s29, 4 }
  0x30   : > { %s161_s5 = scalar_lea.sflag (!%p155_p3), [#allocation3], %s776_s29  ;;  %s164_s7 = scalar_lea.vmem (!%p155_p3), [#allocation2], %s468_s30 }
  0x36   : > { %624 = dma.done.wait (%p714_p6), %s161_s5, 256  }
  0x37   : > { %626 = vsyncadd (%p714_p6), %s161_s5, 4294967040  ;;  %v187_v0 = vld [vmem:[%s164_s7] sm:$0xff]  ;;  %v188_v1 = vld [vmem:[%s164_s7 + $0x8] sm:$0xff]  ;;  %v648_v3 = vmov 0.0   ;;  %vm649_vm0 = vmmov 0   ;;  %v196_v5 = vlaneseq  ;;  %vm202_vm1 = vcmask 64512  }
  0x38   : > { %v189_v2 = vadd.f32 %v188_v1, %v187_v0  ;;  %485 = vmatprep.subr.mxu0 %v648_v3  ;;  %v194_v4 = vld [vmem:[%s843_s1] sm:$0xff]  ;;  %490 = vmatprep.subr.mxu1 %v648_v3  ;;  %vm285_vm2 = vcmask 1043456   ;;  %vm281_vm3 = vcmask 31744   ;;  %s480_s9 = sshll.u32 %s692_s16, 8  ;;  %s186_s10 = scalar_lea.vmem [#allocation5], %s468_s30 }
  0x39   : > { %486 = vmatpush3.msra.mxu0 %v194_v4  ;;  %487 = vmatprep.mubr.msk.f32.mxu0 %vm649_vm0, %v648_v3  ;;  %v197_v6 = vand.u32 127, %v196_v5  ;;  %v199_v7 = vshrl.u32 %v196_v5, 7  ;;  %v280_v12 = vld [vmem:[%s844_s2] sm:$0xf]  ;;  %s391_s11 = sshll.u32 %s186_s10, 4  ;;  %s798_s20 = scalar_lea.hbm %s845_s3, %s480_s9  ;;  %s800_s11 = int_to_ptr.vmem [resolvable:$true] %s391_s11 }
  0x3a   : > { %190 = vadd.xlane.f32.xlu0 %v189_v2  ;;  %492 = vmatprep.mubr.msk.f32.mxu1 %vm649_vm0, %v648_v3  ;;  %s377_s22 = scalar_lea.sflag [#allocation4], %s776_s29  ;;  %s579_s16 = scalar_lea.vmem %s800_s11, 256 }
  0x3b   : > { %v200_v8 = vsub.s32 %v197_v6, %v199_v7  ;;  %491 = vmatpush3.msk.msra.mxu1 %vm285_vm2, %v280_v12  ;;  %v367_v25 = vsub.s32 0, %v199_v7  ;;  %p580_p6 = scmp.ne.s32.totalorder %s800_s11, %s579_s16  ;;  %p854_p11 = scmp.ne.s32.totalorder %s849_s24, 0 }
  0x3c   : > { %s650_s26 = smov [#allocation5]  }
  0x3d   : > { %p581_p12 = pnand %p580_p6, %p854_p11  ;;  %s583_s27 = sshll.u32 %s650_s26, 4  ;;  %s584_s27 = int_to_ptr.vmem [resolvable:$false] %s583_s27 }
  0x3e   : > { %s585_s28 = scalar_lea.vmem %s584_s27, 512  ;;  %p586_p7 = scmp.lt.s32.totalorder %s800_s11, %s584_s27 }
  0x3f   : > { %p582_p13 = pneg %p581_p12  ;;  %p587_p10 = scmp.lt.s32.totalorder %s585_s28, %s579_s16 }
  0x41   : > { %p588_p2 = por %p587_p10, %p586_p7 }
  0x43   : > { %p589_p4 = pnand %p588_p2, %p582_p13 }
  0xc7   : > { %v191_v9 = vpop.xlane.xlu0 %190 }
  0xc8   : > { %v193_v10 = vmul.f32 0.00390625, %v191_v9 }
  0xca   : > { %v201_v11 = vrot.slane %v193_v10, %v200_v8 }
  0xcc   : > { %488 = vmatmul.mubr.msk.f32.vlgmr.msra.gmra.mrb[0].mxu0 %vm202_vm1, %v201_v11 }
 0x19f   : > { %v271_v13 = vpop.f32.mrb[0].mxu0 }
 0x1a0   : > { %v276_v14 = vmul.f32 0.70710677, %v271_v13  ;;  %v489_v15 = vpop.f32.mrb[1].mxu0  ;;  %v275_v17 = vmul.f32 0.5, %v271_v13 }
 0x1a2   : > { %543 = verf.f32 %v276_v14 }
 0x1ac   : > { %v544_v16 = vpop.eup %543 }
 0x1ad   : > { %v278_v18 = vadd.f32 1.0, %v544_v16 }
 0x1af   : > { %v279_v19 = vmul.f32 %v278_v18, %v275_v17 }
 0x1b1   : > { %493 = vmatmul.mubr.msk.f32.vlgmr.msra.gmra.mrb[0].mxu1 %vm281_vm3, %v279_v19 }
 0x284   : > { %v355_v20 = vpop.f32.mrb[0].mxu1 }
 0x285   : > { %v473_v21 = vmul.f32 -1.442695, %v355_v20  ;;  %v494_v22 = vpop.f32.mrb[1].mxu1 }
 0x287   : > { %545 = vpow2.f32 %v473_v21 }
 0x291   : > { %v546_v23 = vpop.eup %545 }
 0x292   : > { %v362_v24 = vadd.f32 1.0, %v546_v23 }
 0x294   : > { %547 = vrcp.f32 %v362_v24 }
 0x29e   : > { %v548_v26 = vpop.eup %547 }
 0x29f   : > { %v368_v27 = vrot.slane %v548_v26, %v367_v25 }
 0x2a1   : > { %370 = vbcast.lane.b32.xlu0 %v368_v27, 256 }
 0x313   : > { %v371_v28 = vpop.permute.xlu0 %370 }
 0x314   : > { %v372_v29 = vmul.f32 %v371_v28, %v187_v0  ;;  %v373_v30 = vmul.f32 %v371_v28, %v188_v1 }
 0x316   : > { %374 = vst [vmem:[%s186_s10] sm:$0xff] %v372_v29  ;;  %375 = vst [vmem:[%s186_s10 + $0x8] sm:$0xff] %v373_v30 }
 0x317   : > { %592 = shalt.err (!%p589_p4)
}
 0x318   : > { %s593_s29 = scalar_lea.hbm %s798_s20, 256  ;;  %s597_s7 = scalar_lea.hbm %s845_s3, 512 }
 0x319   : > { %p594_p5 = scmp.ne.s32.totalorder %s798_s20, %s593_s29  ;;  %p598_p0 = scmp.lt.u32.totalorder %s798_s20, %s845_s3 }
 0x31a   : > { %p599_p1 = scmp.lt.u32.totalorder %s597_s7, %s593_s29  ;;  %p601_p6 = scmp.lt.u32.totalorder %s593_s29, %s798_s20 }
 0x31b   : > { %p595_p8 = pnand %p594_p5, %p854_p11 }
 0x31c   : > { %p600_p3 = por %p599_p1, %p598_p0 }
 0x31d   : > { %p596_p9 = pneg %p595_p8 }
 0x31e   : > { %p602_p12 = por %p601_p6, %p600_p3 }
 0x320   : > { %p603_p13 = pnand %p602_p12, %p596_p9 }
 0x322   : > { %606 = shalt.err (!%p603_p13)
}
 0x323   : > { %497 = dma.vmem_to_hbm [thread:$0]  (%p854_p11), %s800_s11, 256, %s798_s20, %s377_s22  }
 0x324 PF: > { %s403_s23 = sand.u32 1, %s633_s12   ;;  %p855_p7 = scmp.ne.s32.totalorder %s850_s25, 0 }
 0x325   : > { %p856_p10 = scmp.ge.s32.totalorder %s645_s15, 2  ;;  %s404_s8 = scalar_lea.sflag [#allocation4], %s403_s23 }
 0x327   : > { %p504_p2 = pnand %p856_p10, %p855_p7 }
 0x329   : > { %628 = dma.done.wait (!%p504_p2), %s404_s8, 256  }
 0x32a   : > { %630 = vsyncadd (!%p504_p2), %s404_s8, 4294967040  ;;  %p16_p4 = scmp.ge.s32.totalorder %s696_s18, 4   ;;  %s857_s12 = smov %s637_s13 }
 0x32b   : > { %s858_s13 = smov %s641_s14  ;;  %s859_s14 = smov %s708_s21 }
 0x32c   : > { %s860_s15 = smov %s696_s18  ;;  %18 = sbr.rel (!%p16_p4) target bundleno = 5 (0x5), region = 77 }
 0x333   :  { %409 = vsyncpa [#allocation3], 1 }
 0x334   :  { %411 = vsyncpa [#allocation3 + $0x1], 1 }
 0x335   :  { %412 = vsyncpa [#allocation4], 1 }
 0x336   :  { %414 = vsyncpa [#allocation4 + $0x1], 1 }

</bundles_post_ra>
